<compile_context>
chip_gen: v5e
topology: v5e:2x2
jax: 0.10.0
libtpu: 0.0.40
codegen_flags: <defaults>
</compile_context>

<pallas_src>
import jax
import jax.numpy as jnp
from jax.experimental import pallas as pl
from jax.experimental.pallas import tpu as pltpu

_LANES = 128
_SUBLANES = 8
_TARGET_TILE_BYTES = 4 * 1024 * 1024      # ~4 MiB of real x payload per grid step
_VMEM_BUDGET_BYTES = 36 * 1024 * 1024     # double-buffered in+out blocks (fits v7x's 64 MiB)
_VMEM_LIMIT_BYTES = 48 * 1024 * 1024      # scoped VMEM limit (<= v7x physical, << v5e/v6e 128 MiB)


def _round_up(n, m):
    return ((n + m - 1) // m) * m


def _pick_block_rows(n_rows, hbm_row_bytes, vmem_row_bytes, vmem_budget_bytes):
    """Rows per grid step: ~_TARGET_TILE_BYTES of real payload, capped by the
    lane-padded double-buffered VMEM footprint, never exceeding the array, and
    leaving >= 2 grid steps when there is enough work (v7x megacore)."""
    rows = max(_SUBLANES, _TARGET_TILE_BYTES // max(hbm_row_bytes, 1))
    rows = min(rows, max(_SUBLANES, vmem_budget_bytes // max(2 * vmem_row_bytes, 1)))
    rows = _round_up(rows, _SUBLANES)
    # Never let a block exceed the array (callers guarantee n_rows >= 8), so the
    # only irregular block is a standard ragged *last* block.
    rows = min(rows, (n_rows // _SUBLANES) * _SUBLANES)
    # Keep >= 2 grid steps so dimension_semantics=("parallel",) can shard the
    # batch across both TensorCores on v7x (no-op on v5e/v6e).
    if n_rows >= 2 * _SUBLANES:
        rows = min(rows, _round_up(pl.cdiv(n_rows, 2), _SUBLANES))
    return max(rows, _SUBLANES)


def _rowwise_kernel(x_ref, w_ref, b_ref, o_ref):
    # x_ref: (TB, D) VMEM tile streamed by the grid (double-buffered).
    # w_ref: (1, D)  VMEM, resident across grid steps (constant index_map);
    #        the (1, D) -> (TB, D) broadcast should fold into the multiply as a
    #        sublane-stride-0 operand (free to verify in the bundle dump).
    # b_ref: (1, 1)  SMEM scalar.
    x = x_ref[...]
    w = w_ref[...]
    b = b_ref[0, 0]
    # Width-1 matvec: VPU multiply + XLU lane reduce (MXU skipped on purpose).
    z = jnp.sum(x * w, axis=-1, keepdims=True) + b          # (TB, 1) f32
    # Exact sigmoid: the kernel is HBM-bound, so exp (EUP) and the true divide
    # cost zero wall time and match torch.sigmoid to f32 precision.
    o_ref[...] = 1.0 / (1.0 + jnp.exp(-z))


def _packed_kernel(x_ref, w_ref, b_ref, o_ref):
    # x_ref: (TB, R*D) -- R=128 original rows packed per lane-row (free reshape).
    # w_ref: (R*D, R)  -- block-diagonal weight, VMEM-resident across the grid.
    # o_ref: (TB, R)   -- lane-dense output block (unmasked, contiguous stores).
    z = jnp.dot(x_ref[...], w_ref[...],
                preferred_element_type=jnp.float32,
                precision=jax.lax.Precision.HIGHEST) + b_ref[0, 0]
    o_ref[...] = 1.0 / (1.0 + jnp.exp(-z))


def _forward_rowwise(x, w, b):
    orig_b = x.shape[0]
    if orig_b < _SUBLANES:
        # Tiny batch: pad to one sublane-aligned block (at most 7 extra rows).
        x = jnp.pad(x, ((0, _SUBLANES - orig_b), (0, 0)))
    n, d = x.shape
    hbm_row = d * 4
    # x block pads its last dim to 128 lanes in VMEM; the (tb, 1) output block
    # does too.  Account for both (double-buffered) when sizing the tile.
    vmem_row = (_round_up(d, _LANES) + _LANES) * 4
    tb = _pick_block_rows(n, hbm_row, vmem_row, _VMEM_BUDGET_BYTES)
    grid = (pl.cdiv(n, tb),)
    cost = pl.CostEstimate(
        flops=2 * orig_b * d,
        transcendentals=2 * orig_b,
        bytes_accessed=orig_b * d * 4 + orig_b * 4 + d * 4 + 4,
    )
    out = pl.pallas_call(
        _rowwise_kernel,
        out_shape=jax.ShapeDtypeStruct((n, 1), jnp.float32),
        grid=grid,
        in_specs=[
            pl.BlockSpec((tb, d), lambda i: (i, 0)),              # streamed x
            pl.BlockSpec((1, d), lambda i: (0, 0)),               # resident weight
            pl.BlockSpec(memory_space=pltpu.MemorySpace.SMEM),    # scalar bias
        ],
        out_specs=pl.BlockSpec((tb, 1), lambda i: (i, 0)),
        compiler_params=pltpu.CompilerParams(
            dimension_semantics=("parallel",),
            vmem_limit_bytes=_VMEM_LIMIT_BYTES,
        ),
        cost_estimate=cost,
    )(x, w, b)
    return out[:orig_b]


def _forward_packed(x, w, b):
    bsz, d = x.shape
    r = _LANES                      # 128 original rows per packed lane-row
    n = bsz // r
    kd = r * d
    # Free, row-major (bitcast) reshape: no extra HBM pass.
    x_packed = x.reshape(n, kd)
    # Block-diagonal weight: w_bd[j*d + c, j] = w[0, c]   (tiny, built once).
    w_bd = (jnp.eye(r, dtype=jnp.float32)[:, None, :]
            * w.reshape(1, d, 1)).reshape(kd, r)
    hbm_row = kd * 4
    vmem_row = (kd + r) * 4          # x block + lane-dense out block (lane-aligned)
    budget = _VMEM_BUDGET_BYTES - kd * r * 4   # room for the resident weight
    tb = _pick_block_rows(n, hbm_row, vmem_row, budget)
    grid = (pl.cdiv(n, tb),)
    cost = pl.CostEstimate(
        flops=2 * n * kd * r,
        transcendentals=2 * bsz,
        bytes_accessed=bsz * d * 4 + bsz * 4 + kd * r * 4 + 4,
    )
    out = pl.pallas_call(
        _packed_kernel,
        out_shape=jax.ShapeDtypeStruct((n, r), jnp.float32),
        grid=grid,
        in_specs=[
            pl.BlockSpec((tb, kd), lambda i: (i, 0)),             # streamed packed x
            pl.BlockSpec((kd, r), lambda i: (0, 0)),              # resident block-diag weight
            pl.BlockSpec(memory_space=pltpu.MemorySpace.SMEM),    # scalar bias
        ],
        out_specs=pl.BlockSpec((tb, r), lambda i: (i, 0)),
        compiler_params=pltpu.CompilerParams(
            dimension_semantics=("parallel",),
            vmem_limit_bytes=_VMEM_LIMIT_BYTES,
        ),
        cost_estimate=cost,
    )(x_packed, w_bd, b)
    return out.reshape(bsz, 1)      # free bitcast reshape back to (B, 1)


@jax.jit
def discriminator_forward(x, w, b):
    """sigmoid(x @ w.T + b) with torch nn.Linear(input_dim, 1) parameter layout.

    x: (B, D) f32, w: (1, D) f32, b: (1,) or (1, 1) f32 -> (B, 1) f32.
    """
    x = jnp.asarray(x, jnp.float32)
    w = jnp.asarray(w, jnp.float32).reshape(1, -1)
    b = jnp.asarray(b, jnp.float32).reshape(1, 1)
    bsz, d = x.shape
    # Lane-dense fast path for small feature dims: pack 128 rows per VMEM
    # lane-row (free reshape) so each grid step streams ~4 MiB of *real* bytes
    # (instead of a 128/D lane-padding blowup) and stores a (tb, 128) output.
    if d <= 64 and bsz % _LANES == 0 and bsz // _LANES >= _SUBLANES:
        return _forward_packed(x, w, b)
    return _forward_rowwise(x, w, b)


if __name__ == "__main__":
    input_dim = 3

    key = jax.random.PRNGKey(0)
    k_w, k_b, k1, k2, k3 = jax.random.split(key, 5)

    # Parameters in torch nn.Linear(input_dim, 1) layout.
    w = jax.random.normal(k_w, (1, input_dim), dtype=jnp.float32) * 0.1
    b = jax.random.normal(k_b, (1,), dtype=jnp.float32) * 0.1

    def reference(x):
        return jax.nn.sigmoid(x @ w.T + b)

    # (8: aligned row-wise path), (13: ragged last block), (1024: packed
    # lane-dense MXU path).  All tiny amounts of data.
    for batch, k in ((8, k1), (13, k2), (1024, k3)):
        x = jax.random.normal(k, (batch, input_dim), dtype=jnp.float32)
        out = jax.block_until_ready(discriminator_forward(x, w, b))
        ref = reference(x)
        assert out.shape == (batch, 1), (out.shape, batch)
        err = float(jnp.max(jnp.abs(out - ref)))
        assert jnp.allclose(out, ref, atol=1e-3, rtol=1e-3), (batch, err)

    print("KERNEL_OK")
</pallas_src>

<mosaic_0001>
module attributes {stable_mosaic.version = 11 : i64} {
  func.func @_rowwise_kernel(%arg0: i32, %arg1: memref<8x3xf32, #tpu.memory_space<vmem>>, %arg2: memref<1x3xf32, #tpu.memory_space<vmem>>, %arg3: memref<1x1xf32, #tpu.memory_space<smem>>, %arg4: memref<8x1xf32, #tpu.memory_space<vmem>>) attributes {dimension_semantics = [#tpu.dimension_semantics<parallel>], iteration_bounds = array<i64: 1>, scalar_prefetch = 0 : i64, scratch_operands = 0 : i64, tpu.core_type = #tpu.core_type<tc>, window_params = [{transform_indices = @transform_0, window_bounds = array<i64: 8, 3>}, {pipeline_mode = #tpu.pipeline_mode<synchronous>, transform_indices = @transform_1, window_bounds = array<i64: 1, 3>}, {transform_indices = @transform_2, window_bounds = array<i64: 1, 1>}, {transform_indices = @transform_3, window_bounds = array<i64: 8, 1>}]} {
    %c0 = arith.constant 0 : index
    %c0_0 = arith.constant 0 : index
    %0 = vector.load %arg1[%c0, %c0_0] : memref<8x3xf32, #tpu.memory_space<vmem>>, vector<8x3xf32>
    %c0_1 = arith.constant 0 : index
    %c0_2 = arith.constant 0 : index
    %1 = vector.load %arg2[%c0_1, %c0_2] : memref<1x3xf32, #tpu.memory_space<vmem>>, vector<1x3xf32>
    %c0_3 = arith.constant 0 : index
    %c0_4 = arith.constant 0 : index
    %2 = memref.load %arg3[%c0_3, %c0_4] : memref<1x1xf32, #tpu.memory_space<smem>>
    %3 = vector.broadcast %1 : vector<1x3xf32> to vector<8x3xf32>
    %4 = arith.mulf %0, %3 : vector<8x3xf32>
    %cst = arith.constant dense<0.000000e+00> : vector<8xf32>
    %5 = vector.multi_reduction <add>, %4, %cst [1] : vector<8x3xf32> to vector<8xf32>
    %6 = vector.shape_cast %5 : vector<8xf32> to vector<8x1xf32>
    %7 = vector.broadcast %2 : f32 to vector<8x1xf32>
    %8 = arith.addf %6, %7 : vector<8x1xf32>
    %cst_5 = arith.constant 0.000000e+00 : f32
    %9 = vector.broadcast %cst_5 : f32 to vector<8x1xf32>
    %10 = arith.subf %9, %8 : vector<8x1xf32>
    %11 = math.exp %10 : vector<8x1xf32>
    %cst_6 = arith.constant 1.000000e+00 : f32
    %12 = vector.broadcast %cst_6 : f32 to vector<8x1xf32>
    %13 = arith.addf %12, %11 : vector<8x1xf32>
    %cst_7 = arith.constant 1.000000e+00 : f32
    %14 = vector.broadcast %cst_7 : f32 to vector<8x1xf32>
    %15 = arith.divf %14, %13 : vector<8x1xf32>
    %c0_8 = arith.constant 0 : index
    %c0_9 = arith.constant 0 : index
    %16 = vector.load %arg4[%c0_8, %c0_9] : memref<8x1xf32, #tpu.memory_space<vmem>>, vector<8x1xf32>
    tpu.vector_store %arg4[%c0_8, %c0_9], %15 {strides = array<i32>} : memref<8x1xf32, #tpu.memory_space<vmem>>, vector<8x1xf32>,
    return
  }
  func.func @transform_0(%arg0: i32) -> (i32, i32) {
    %c0_i32 = arith.constant 0 : i32
    %c0_i32_0 = arith.constant 0 : i32
    return %arg0, %c0_i32 : i32, i32
  }
  func.func @transform_1(%arg0: i32) -> (i32, i32) {
    %c0_i32 = arith.constant 0 : i32
    %c0_i32_0 = arith.constant 0 : i32
    %c0_i32_1 = arith.constant 0 : i32
    return %c0_i32, %c0_i32_0 : i32, i32
  }
  func.func @transform_2(%arg0: i32) -> (i32, i32) {
    %c0_i32 = arith.constant 0 : i32
    %c0_i32_0 = arith.constant 0 : i32
    %c0_i32_1 = arith.constant 0 : i32
    return %c0_i32, %c0_i32_0 : i32, i32
  }
  func.func @transform_3(%arg0: i32) -> (i32, i32) {
    %c0_i32 = arith.constant 0 : i32
    %c0_i32_0 = arith.constant 0 : i32
    return %arg0, %c0_i32 : i32, i32
  }
}

</mosaic_0001>

<bundles_post_ra>
// kernel: discriminator_forward.1
= control target key start
LH: loop header
LB: loop body
LE: loop exit
PB: predicated region body
PF: predicated region fallthrough
CT: control target
= control target key end

     0   :  { %vm22_vm0 = vcmask 23552   ;;  %vm47_vm4 = vcmask 7168   ;;  %s90_s0 = inlined_call_operand.vmem [shape: f32[8,3], index: 0, kind: input, shape index: {}]   ;;  %s91_s1 = inlined_call_operand.vmem [shape: f32[1,3], index: 1, kind: input, shape index: {}]   ;;  %s92_s2 = inlined_call_operand.<no memory space> [shape: f32[1,1], index: 2, kind: input, shape index: {}]   ;;  %s93_s3 = inlined_call_operand.vmem [shape: f32[8,1], index: 3, kind: output, shape index: {}]  }
   0x1   :  { %v15_v0 = vld [vmem:[%s90_s0] sm:$0xff]  ;;  %v26_v4 = vstv %s92_s2 }
   0x2   :  { %v53_v1 = vld [vmem:[%s91_s1] ss:$0 sm:$0xff] }
   0x3   :  { %v21_v2 = vmul.f32 %v53_v1, %v15_v0 }
   0x5   :  { %v23_v3 = vsel %vm22_vm0, %v21_v2, 0.0 }
   0x6   :  { %24 = vadd.xlane.f32.xlu0 %v23_v3 }
  0x79   :  { %v25_v5 = vpop.xlane.xlu0 %24 }
  0x7a   :  { %v27_v6 = vadd.f32 %v26_v4, %v25_v5 }
  0x7c   :  { %v28_v7 = vsub.f32 0.0, %v27_v6 }
  0x7e   :  { %v29_v8 = vmul.f32 1.442695, %v28_v7 }
  0x80   :  { %54 = vpow2.f32 %v29_v8 }
  0x86   :  { %v55_v9 = vpop.eup %54 }
  0x87   :  { %v31_v10 = vadd.f32 1.0, %v55_v9 }
  0x89   :  { %56 = vrcp.f32 %v31_v10  ;;  %v43_v14 = vand.u32 2147483648, %v31_v10  ;;  %v41_v16 = vand.u32 2147483647, %v31_v10  ;;  %vm37_vm2 = vweird.f32 %v31_v10 }
  0x8b   :  { %v44_v18 = vor.u32 1.1754944e-38, %v43_v14  ;;  %vm42_vm5 = vcmp.eq.f32.partialorder %v41_v16, 8.507059e+37 }
  0x8f   :  { %v57_v11 = vpop.eup %56 }
  0x90   :  { %v33_v12 = vmul.f32 %v57_v11, %v31_v10  ;;  %vm38_vm1 = vweird.f32 %v57_v11 }
  0x91   :  { %vm39_vm3 = vmor %vm37_vm2, %vm38_vm1 }
  0x92   :  { %v34_v13 = vsub.f32 1.0, %v33_v12 }
  0x94   :  { %v35_v15 = vmul.f32 %v57_v11, %v34_v13 }
  0x96   :  { %v36_v17 = vadd.f32 %v57_v11, %v35_v15 }
  0x98   :  { %v40_v19 = vsel %vm39_vm3, %v57_v11, %v36_v17 }
  0x99   :  { %v45_v20 = vsel %vm42_vm5, %v44_v18, %v40_v19 }
  0x9a   :  { %48 = vst.msk [vmem:[%s93_s3] sm:$0xff] %vm47_vm4, %v45_v20 }

</bundles_post_ra>
